<compile_context>
chip_gen: v5e
topology: v5e:2x2
jax: 0.10.0
libtpu: 0.0.40
codegen_flags: <defaults>
</compile_context>

<pallas_src>
import functools

import jax
import jax.numpy as jnp
from jax.experimental import pallas as pl


_LANES = 128   # lane width of the packed parameter slab / kernel output


# ----------------------------- Pallas kernel ------------------------------- #

def predictor_fused_kernel(adj_ref, x_ref, params_ref, out_ref, *,
                           layout, batch, nodes, hidden, pred_hidden, n_tasks):
    """Whole Predictor forward (both branches + head), single program, no grid.

    adj_ref:    (2*B*N, 2*B*N) cross-branch block-diagonal normalized adjacency
    x_ref:      (2*B*N, 2*F)   node features, branch-0 in lanes [0:F), branch-1 in [F:2F)
    params_ref: (rows, 128)    packed parameter slab (static row/lane slices)
    out_ref:    (B, 128)       final result broadcast across lanes (slice [:, :1] outside)
    """
    H, PH, T, B, N = hidden, pred_hidden, n_tasks, batch, nodes

    def take(name):                       # static slices -> cheap views
        off, r, c = layout[name]
        return params_ref[off:off + r, :c]

    adj = adj_ref[...]                    # (2BN, 2BN)
    h = x_ref[...]                        # (2BN, 2F)

    # ---- GCN layer 0: one fused (Wg|Wr) matmul, cross-branch block-diag ----
    hw = jnp.dot(h, take("w0"), preferred_element_type=jnp.float32)      # (2BN, 4H)
    gc = jnp.maximum(jnp.dot(adj, hw[:, :2 * H],
                             preferred_element_type=jnp.float32) + take("gb0"), 0.0)
    res = jnp.maximum(hw[:, 2 * H:] + take("rb0"), 0.0)
    h = (gc + res) * take("s0") + take("t0")                             # BN (eval, folded)

    # ---- GCN layer 1 ----
    hw = jnp.dot(h, take("w1"), preferred_element_type=jnp.float32)      # (2BN, 4H)
    gc = jnp.maximum(jnp.dot(adj, hw[:, :2 * H],
                             preferred_element_type=jnp.float32) + take("gb1"), 0.0)
    res = jnp.maximum(hw[:, 2 * H:] + take("rb1"), 0.0)
    h = (gc + res) * take("s1") + take("t1")                             # (2BN, 2H)

    # ---- WeightedSumAndMax readout, both branches at once ----
    # Wrong-branch lane blocks of h are exactly zero (masked bias slabs), so the
    # lane reduces below are per-branch correct.
    h3 = h.reshape(2 * B, N, 2 * H)                                      # sublane split (N=8)
    gate = jax.nn.sigmoid(jnp.sum(h3 * take("aw"), axis=-1, keepdims=True)
                          + take("ab")[:, None, :])                      # (2B, N, 2H), lane-const
    h_sum = jnp.sum(gate * h3, axis=1)                                   # (2B, 2H)
    h_max = jnp.max(h3, axis=1)                                          # (2B, 2H)
    g_cat = jnp.concatenate([h_sum, h_max], axis=-1)                     # (2B, 4H) = 128 lanes

    # ---- MLPPredictor (both branches; its BatchNorm folded into mw1) ----
    z = jnp.maximum(jnp.dot(g_cat, take("mw0"),
                            preferred_element_type=jnp.float32) + take("mb0"), 0.0)
    br = jnp.dot(z, take("mw1"), preferred_element_type=jnp.float32) + take("bm1")  # (2B, 2T)

    # ---- head: rows [0:B) hold wt in lanes [0:T), rows [B:2B) hold mut in [T:2T).
    # Wrong lane blocks are exact zeros, so a row-block add == the lane concat.
    x_head = br[:B] + br[B:]                                             # (B, 2T = 128)
    hh = jnp.maximum(jnp.dot(x_head, take("pw0"),
                             preferred_element_type=jnp.float32) + take("pb0"), 0.0)
    res_out = jnp.sum(hh * take("pw1"), axis=-1, keepdims=True)          # Linear(64,1) as VPU+reduce
    out_ref[...] = res_out + take("pb1")                                 # lane-dense (B, 128)


# ------------------------------ Wrapper ------------------------------------ #

def build_predictor(layout, batch, nodes, hidden, pred_hidden, n_tasks):
    kernel = functools.partial(
        predictor_fused_kernel, layout=layout, batch=batch, nodes=nodes,
        hidden=hidden, pred_hidden=pred_hidden, n_tasks=n_tasks)

    @jax.jit
    def forward(adj_all, x_all, params_slab):
        out = pl.pallas_call(
            kernel,
            out_shape=jax.ShapeDtypeStruct((batch, _LANES), jnp.float32),
        )(adj_all, x_all, params_slab)
        return out[:, :1]                  # (B, 1)

    return forward


# --------------------------- Parameter init -------------------------------- #

def _linear(key, fin, fout, scale=0.1):
    kw, kb = jax.random.split(key)
    w = scale * jax.random.normal(kw, (fin, fout), jnp.float32)
    b = scale * jax.random.normal(kb, (1, fout), jnp.float32)
    return w, b


def _bn_fold(key, feat, eps=1e-5):
    # eval-mode BatchNorm with running_mean=0, running_var=1 and synthetic gamma/beta
    kg, kb = jax.random.split(key)
    gamma = 1.0 + 0.1 * jax.random.normal(kg, (1, feat), jnp.float32)
    beta = 0.1 * jax.random.normal(kb, (1, feat), jnp.float32)
    return gamma / jnp.sqrt(1.0 + eps), beta      # scale, shift


def init_gcn_predictor_params(key, in_feats, hidden=32, pred_hidden=32, n_tasks=64):
    ks = jax.random.split(key, 10)
    gw0, gb0 = _linear(ks[0], in_feats, hidden)          # GraphConv 0
    rw0, rb0 = _linear(ks[1], in_feats, hidden)          # residual connection 0
    s0, t0 = _bn_fold(ks[2], hidden)                     # BatchNorm 0 (eval)
    gw1, gb1 = _linear(ks[3], hidden, hidden)            # GraphConv 1
    rw1, rb1 = _linear(ks[4], hidden, hidden)            # residual connection 1
    s1, t1 = _bn_fold(ks[5], hidden)                     # BatchNorm 1 (eval)
    aw, ab = _linear(ks[6], hidden, 1)                   # atom weighting (readout)
    mw0, mb0 = _linear(ks[7], 2 * hidden, pred_hidden)   # MLPPredictor linear 0
    sm, tm_ = _bn_fold(ks[8], pred_hidden)               # MLPPredictor BatchNorm
    mw1, mb1 = _linear(ks[9], pred_hidden, n_tasks)      # MLPPredictor linear 1
    return (gw0, gb0, rw0, rb0, s0, t0,
            gw1, gb1, rw1, rb1, s1, t1,
            aw, ab, mw0, mb0, sm, tm_, mw1, mb1)


def init_head_params(key, n_tasks=64):
    k0, k1 = jax.random.split(key)
    pw0, pb0 = _linear(k0, 2 * n_tasks, 64)
    pw1, pb1 = _linear(k1, 64, 1)
    return (pw0, pb0, pw1, pb1)


# ----------------------- Host-side packing / folding ----------------------- #

def _pack_params(items):
    """items: list of (name, 2-D array).  Returns (slab, layout name->(off, rows, cols)).
    Each segment is 8-row aligned so in-kernel row slices start on sublane tiles."""
    layout, placed, off = {}, [], 0
    for name, arr in items:
        arr = jnp.asarray(arr, jnp.float32)
        r, c = arr.shape
        assert c <= _LANES, (name, arr.shape)
        layout[name] = (off, r, c)
        placed.append((off, arr))
        off += -(-r // 8) * 8
    slab = jnp.zeros((max(off, 8), _LANES), jnp.float32)
    for o, arr in placed:
        slab = slab.at[o:o + arr.shape[0], :arr.shape[1]].set(arr)
    return slab, layout


def pack_all_params(raw1, raw2, raw_head, *, B, N, in_feats, hidden, pred_hidden, n_tasks):
    """Fold BN, merge Wg|Wr per layer, build cross-branch block-diagonal weights and
    per-row-block masked bias slabs, and pack everything into one (rows, 128) slab."""
    F, H, PH, T, BN = in_feats, hidden, pred_hidden, n_tasks, B * N
    (gw0a, gb0a, rw0a, rb0a, s0a, t0a, gw1a, gb1a, rw1a, rb1a, s1a, t1a,
     awa, aba, mw0a, mb0a, sma, tma, mw1a, mb1a) = raw1
    (gw0b, gb0b, rw0b, rb0b, s0b, t0b, gw1b, gb1b, rw1b, rb1b, s1b, t1b,
     awb, abb, mw0b, mb0b, smb, tmb, mw1b, mb1b) = raw2
    pw0, pb0, pw1, pb1 = raw_head

    # Layer weights: lanes [0:2H) = GraphConv path, lanes [2H:4H) = residual path,
    # each lane-block-diagonal across the two branches.
    w0 = jnp.zeros((2 * F, 4 * H), jnp.float32)
    w0 = w0.at[:F, :H].set(gw0a).at[F:, H:2 * H].set(gw0b)
    w0 = w0.at[:F, 2 * H:3 * H].set(rw0a).at[F:, 3 * H:].set(rw0b)
    w1 = jnp.zeros((2 * H, 4 * H), jnp.float32)
    w1 = w1.at[:H, :H].set(gw1a).at[H:, H:2 * H].set(gw1b)
    w1 = w1.at[:H, 2 * H:3 * H].set(rw1a).at[H:, 3 * H:].set(rw1b)

    # Per-row-block masked, pre-broadcast bias/shift slabs (keep wrong lanes == 0).
    def masked(vec_a, vec_b):
        s = jnp.zeros((2 * BN, 2 * H), jnp.float32)
        s = s.at[:BN, :H].set(jnp.broadcast_to(vec_a, (BN, H)))
        return s.at[BN:, H:].set(jnp.broadcast_to(vec_b, (BN, H)))

    def full(vec_a, vec_b):                 # multiplicative terms: masking not needed
        return jnp.broadcast_to(jnp.concatenate([vec_a, vec_b], axis=1), (2 * BN, 2 * H))

    # Readout params.
    aw_row = jnp.concatenate([awa.T, awb.T], axis=1)                       # (1, 2H)
    ab_slab = jnp.concatenate([jnp.full((B, 2 * H), aba[0, 0], jnp.float32),
                               jnp.full((B, 2 * H), abb[0, 0], jnp.float32)], axis=0)

    # MLPPredictor: concat([h_sum, h_max]) @ mw0 as one (4H, 2PH) block matrix.
    mw0 = jnp.zeros((4 * H, 2 * PH), jnp.float32)
    mw0 = mw0.at[:H, :PH].set(mw0a[:H]).at[H:2 * H, PH:].set(mw0b[:H])
    mw0 = mw0.at[2 * H:3 * H, :PH].set(mw0a[H:]).at[3 * H:, PH:].set(mw0b[H:])
    mb0_slab = jnp.zeros((2 * B, 2 * PH), jnp.float32)
    mb0_slab = mb0_slab.at[:B, :PH].set(jnp.broadcast_to(mb0a, (B, PH)))
    mb0_slab = mb0_slab.at[B:, PH:].set(jnp.broadcast_to(mb0b, (B, PH)))

    # Fold MLP eval-mode BN into the last linear:  (z*s+t)@W+b == z@(s.T*W) + (t@W+b).
    mw1fa, mb1fa = sma.T * mw1a, tma @ mw1a + mb1a
    mw1fb, mb1fb = smb.T * mw1b, tmb @ mw1b + mb1b
    mw1 = jnp.zeros((2 * PH, 2 * T), jnp.float32)
    mw1 = mw1.at[:PH, :T].set(mw1fa).at[PH:, T:].set(mw1fb)
    bm1_slab = jnp.zeros((2 * B, 2 * T), jnp.float32)
    bm1_slab = bm1_slab.at[:B, :T].set(jnp.broadcast_to(mb1fa, (B, T)))
    bm1_slab = bm1_slab.at[B:, T:].set(jnp.broadcast_to(mb1fb, (B, T)))

    items = [
        ("w0", w0), ("w1", w1), ("mw0", mw0), ("mw1", mw1), ("pw0", pw0),
        ("gb0", masked(gb0a, gb0b)), ("rb0", masked(rb0a, rb0b)),
        ("s0", full(s0a, s0b)), ("t0", masked(t0a, t0b)),
        ("gb1", masked(gb1a, gb1b)), ("rb1", masked(rb1a, rb1b)),
        ("s1", full(s1a, s1b)), ("t1", masked(t1a, t1b)),
        ("aw", aw_row), ("ab", ab_slab), ("mb0", mb0_slab), ("bm1", bm1_slab),
        ("pb0", pb0), ("pw1", pw1.T),
        ("pb1", jnp.full((1, _LANES), pb1[0, 0], jnp.float32)),
    ]
    return _pack_params(items)


def block_diag_adj(adj):
    """(B, N, N) per-graph adjacencies -> (B*N, B*N) block-diagonal batched graph."""
    B, N, _ = adj.shape
    eye = jnp.eye(B, dtype=adj.dtype)
    return (eye[:, None, :, None] * adj[:, :, None, :]).reshape(B * N, B * N)


def pack_graph_inputs(adj_wt, adj_mut, x_wt, x_mut):
    """Cross-branch block-diagonal adjacency + lane-block node features."""
    B, N, _ = adj_wt.shape
    F, BN = x_wt.shape[-1], B * N
    adj_all = jnp.zeros((2 * BN, 2 * BN), jnp.float32)
    adj_all = adj_all.at[:BN, :BN].set(block_diag_adj(adj_wt))
    adj_all = adj_all.at[BN:, BN:].set(block_diag_adj(adj_mut))
    x_all = jnp.zeros((2 * BN, 2 * F), jnp.float32)
    x_all = x_all.at[:BN, :F].set(x_wt.reshape(BN, F))
    x_all = x_all.at[BN:, F:].set(x_mut.reshape(BN, F))
    return adj_all, x_all


def make_graph_batch(key, B, N):
    """Random symmetric graphs with self loops, symmetric-normalized (glue)."""
    a = jax.random.bernoulli(key, 0.4, (B, N, N)).astype(jnp.float32)
    a = jnp.maximum(a, jnp.swapaxes(a, 1, 2))
    a = jnp.maximum(a, jnp.eye(N, dtype=jnp.float32)[None])
    d_inv_sqrt = 1.0 / jnp.sqrt(jnp.sum(a, axis=-1))
    return a * d_inv_sqrt[:, :, None] * d_inv_sqrt[:, None, :]


# ------------------------- Pure-JAX reference ------------------------------ #

def _gcn_branch_reference(adj, x, raw):
    (gw0, gb0, rw0, rb0, s0, t0, gw1, gb1, rw1, rb1, s1, t1,
     aw, ab, mw0, mb0, sm, tm_, mw1, mb1) = raw
    h = x
    gc = jnp.maximum(jnp.einsum('bij,bjh->bih', adj, h @ gw0) + gb0, 0.0)
    res = jnp.maximum(h @ rw0 + rb0, 0.0)
    h = (gc + res) * s0 + t0
    gc = jnp.maximum(jnp.einsum('bij,bjh->bih', adj, h @ gw1) + gb1, 0.0)
    res = jnp.maximum(h @ rw1 + rb1, 0.0)
    h = (gc + res) * s1 + t1
    w = jax.nn.sigmoid(h @ aw + ab)
    g = jnp.concatenate([jnp.sum(w * h, axis=1), jnp.max(h, axis=1)], axis=1)
    z = jnp.maximum(g @ mw0 + mb0, 0.0)
    z = z * sm + tm_
    return z @ mw1 + mb1


def predictor_reference(adjs, feats, raw1, raw2, head_raw):
    pw0, pb0, pw1, pb1 = head_raw
    wt = _gcn_branch_reference(adjs[0], feats[0], raw1)
    mut = _gcn_branch_reference(adjs[1], feats[1], raw2)
    hh = jnp.maximum(jnp.concatenate([wt, mut], axis=1) @ pw0 + pb0, 0.0)
    return hh @ pw1 + pb1


# --------------------------------- Main ------------------------------------ #

if __name__ == "__main__":
    B, N, IN_FEATS = 2, 8, 16
    HIDDEN, PRED_HIDDEN, N_TASKS = 32, 32, 64

    root = jax.random.PRNGKey(0)
    k_adj0, k_adj1, k_x0, k_x1, k_p1, k_p2, k_head = jax.random.split(root, 7)

    adj_wt = make_graph_batch(k_adj0, B, N)
    adj_mut = make_graph_batch(k_adj1, B, N)
    x_wt = jax.random.normal(k_x0, (B, N, IN_FEATS), jnp.float32)
    x_mut = jax.random.normal(k_x1, (B, N, IN_FEATS), jnp.float32)

    raw1 = init_gcn_predictor_params(k_p1, IN_FEATS, HIDDEN, PRED_HIDDEN, N_TASKS)
    raw2 = init_gcn_predictor_params(k_p2, IN_FEATS, HIDDEN, PRED_HIDDEN, N_TASKS)
    raw_head = init_head_params(k_head, N_TASKS)

    adj_all, x_all = pack_graph_inputs(adj_wt, adj_mut, x_wt, x_mut)
    params_slab, layout = pack_all_params(
        raw1, raw2, raw_head, B=B, N=N, in_feats=IN_FEATS,
        hidden=HIDDEN, pred_hidden=PRED_HIDDEN, n_tasks=N_TASKS)

    forward = build_predictor(layout, B, N, HIDDEN, PRED_HIDDEN, N_TASKS)
    out = jax.block_until_ready(forward(adj_all, x_all, params_slab))

    assert out.shape == (B, 1), out.shape
    assert jnp.all(jnp.isfinite(out))

    with jax.default_matmul_precision("highest"):
        ref = predictor_reference((adj_wt, adj_mut), (x_wt, x_mut),
                                  raw1, raw2, raw_head)
    assert jnp.allclose(out, ref, rtol=1e-3, atol=1e-3), (out, ref)

    print("KERNEL_OK")
</pallas_src>

<mosaic_0001>
module attributes {stable_mosaic.version = 11 : i64} {
  func.func @predictor_fused_kernel(%arg0: memref<32x32xf32, #tpu.memory_space<vmem>>, %arg1: memref<32x32xf32, #tpu.memory_space<vmem>>, %arg2: memref<728x128xf32, #tpu.memory_space<vmem>>, %arg3: memref<2x128xf32, #tpu.memory_space<vmem>>) attributes {dimension_semantics = [], scalar_prefetch = 0 : i64, scratch_operands = 0 : i64, tpu.core_type = #tpu.core_type<tc>} {
    %c0 = arith.constant 0 : index
    %c0_0 = arith.constant 0 : index
    %0 = vector.load %arg0[%c0, %c0_0] : memref<32x32xf32, #tpu.memory_space<vmem>>, vector<32x32xf32>
    %c0_1 = arith.constant 0 : index
    %c0_2 = arith.constant 0 : index
    %1 = vector.load %arg1[%c0_1, %c0_2] : memref<32x32xf32, #tpu.memory_space<vmem>>, vector<32x32xf32>
    %c0_3 = arith.constant 0 : index
    %c0_4 = arith.constant 0 : index
    %2 = vector.load %arg2[%c0_3, %c0_4] : memref<728x128xf32, #tpu.memory_space<vmem>>, vector<32x128xf32>
    %cst = arith.constant dense<0.000000e+00> : vector<32x128xf32>
    %3 = tpu.matmul %1, %2, %cst {dimension_numbers = #tpu.dot_dimension_numbers<[1], [0], [0], [1], [0, 0, 1, 1], [], []>} : vector<32x32xf32>, vector<32x128xf32>, vector<32x128xf32> -> vector<32x128xf32>
    %4 = vector.extract_strided_slice %3 {offsets = [0, 0], sizes = [32, 64], strides = [1, 1]} : vector<32x128xf32> to vector<32x64xf32>
    %cst_5 = arith.constant dense<0.000000e+00> : vector<32x64xf32>
    %5 = tpu.matmul %0, %4, %cst_5 {dimension_numbers = #tpu.dot_dimension_numbers<[1], [0], [0], [1], [0, 0, 1, 1], [], []>} : vector<32x32xf32>, vector<32x64xf32>, vector<32x64xf32> -> vector<32x64xf32>
    %c416 = arith.constant 416 : index
    %c0_6 = arith.constant 0 : index
    %6 = vector.load %arg2[%c416, %c0_6] : memref<728x128xf32, #tpu.memory_space<vmem>>, vector<32x64xf32>
    %7 = arith.addf %5, %6 : vector<32x64xf32>
    %cst_7 = arith.constant 0.000000e+00 : f32
    %8 = vector.broadcast %cst_7 : f32 to vector<32x64xf32>
    %9 = arith.maximumf %7, %8 : vector<32x64xf32>
    %10 = vector.extract_strided_slice %3 {offsets = [0, 64], sizes = [32, 64], strides = [1, 1]} : vector<32x128xf32> to vector<32x64xf32>
    %c448 = arith.constant 448 : index
    %c0_8 = arith.constant 0 : index
    %11 = vector.load %arg2[%c448, %c0_8] : memref<728x128xf32, #tpu.memory_space<vmem>>, vector<32x64xf32>
    %12 = arith.addf %10, %11 : vector<32x64xf32>
    %cst_9 = arith.constant 0.000000e+00 : f32
    %13 = vector.broadcast %cst_9 : f32 to vector<32x64xf32>
    %14 = arith.maximumf %12, %13 : vector<32x64xf32>
    %15 = arith.addf %9, %14 : vector<32x64xf32>
    %c480 = arith.constant 480 : index
    %c0_10 = arith.constant 0 : index
    %16 = vector.load %arg2[%c480, %c0_10] : memref<728x128xf32, #tpu.memory_space<vmem>>, vector<32x64xf32>
    %17 = arith.mulf %15, %16 : vector<32x64xf32>
    %c512 = arith.constant 512 : index
    %c0_11 = arith.constant 0 : index
    %18 = vector.load %arg2[%c512, %c0_11] : memref<728x128xf32, #tpu.memory_space<vmem>>, vector<32x64xf32>
    %19 = arith.addf %17, %18 : vector<32x64xf32>
    %c32 = arith.constant 32 : index
    %c0_12 = arith.constant 0 : index
    %20 = vector.load %arg2[%c32, %c0_12] : memref<728x128xf32, #tpu.memory_space<vmem>>, vector<64x128xf32>
    %cst_13 = arith.constant dense<0.000000e+00> : vector<32x128xf32>
    %21 = tpu.matmul %19, %20, %cst_13 {dimension_numbers = #tpu.dot_dimension_numbers<[1], [0], [0], [1], [0, 0, 1, 1], [], []>} : vector<32x64xf32>, vector<64x128xf32>, vector<32x128xf32> -> vector<32x128xf32>
    %22 = vector.extract_strided_slice %21 {offsets = [0, 0], sizes = [32, 64], strides = [1, 1]} : vector<32x128xf32> to vector<32x64xf32>
    %cst_14 = arith.constant dense<0.000000e+00> : vector<32x64xf32>
    %23 = tpu.matmul %0, %22, %cst_14 {dimension_numbers = #tpu.dot_dimension_numbers<[1], [0], [0], [1], [0, 0, 1, 1], [], []>} : vector<32x32xf32>, vector<32x64xf32>, vector<32x64xf32> -> vector<32x64xf32>
    %c544 = arith.constant 544 : index
    %c0_15 = arith.constant 0 : index
    %24 = vector.load %arg2[%c544, %c0_15] : memref<728x128xf32, #tpu.memory_space<vmem>>, vector<32x64xf32>
    %25 = arith.addf %23, %24 : vector<32x64xf32>
    %cst_16 = arith.constant 0.000000e+00 : f32
    %26 = vector.broadcast %cst_16 : f32 to vector<32x64xf32>
    %27 = arith.maximumf %25, %26 : vector<32x64xf32>
    %28 = vector.extract_strided_slice %21 {offsets = [0, 64], sizes = [32, 64], strides = [1, 1]} : vector<32x128xf32> to vector<32x64xf32>
    %c576 = arith.constant 576 : index
    %c0_17 = arith.constant 0 : index
    %29 = vector.load %arg2[%c576, %c0_17] : memref<728x128xf32, #tpu.memory_space<vmem>>, vector<32x64xf32>
    %30 = arith.addf %28, %29 : vector<32x64xf32>
    %cst_18 = arith.constant 0.000000e+00 : f32
    %31 = vector.broadcast %cst_18 : f32 to vector<32x64xf32>
    %32 = arith.maximumf %30, %31 : vector<32x64xf32>
    %33 = arith.addf %27, %32 : vector<32x64xf32>
    %c608 = arith.constant 608 : index
    %c0_19 = arith.constant 0 : index
    %34 = vector.load %arg2[%c608, %c0_19] : memref<728x128xf32, #tpu.memory_space<vmem>>, vector<32x64xf32>
    %35 = arith.mulf %33, %34 : vector<32x64xf32>
    %c640 = arith.constant 640 : index
    %c0_20 = arith.constant 0 : index
    %36 = vector.load %arg2[%c640, %c0_20] : memref<728x128xf32, #tpu.memory_space<vmem>>, vector<32x64xf32>
    %37 = arith.addf %35, %36 : vector<32x64xf32>
    %38 = vector.shape_cast %37 : vector<32x64xf32> to vector<4x8x64xf32>
    %c672 = arith.constant 672 : index
    %c0_21 = arith.constant 0 : index
    %39 = vector.load %arg2[%c672, %c0_21] : memref<728x128xf32, #tpu.memory_space<vmem>>, vector<1x64xf32>
    %40 = vector.shape_cast %39 : vector<1x64xf32> to vector<1x1x64xf32>
    %41 = vector.broadcast %40 : vector<1x1x64xf32> to vector<4x8x64xf32>
    %42 = arith.mulf %38, %41 : vector<4x8x64xf32>
    %cst_22 = arith.constant dense<0.000000e+00> : vector<4x8xf32>
    %43 = vector.multi_reduction <add>, %42, %cst_22 [2] : vector<4x8x64xf32> to vector<4x8xf32>
    %44 = vector.shape_cast %43 : vector<4x8xf32> to vector<4x8x1xf32>
    %c680 = arith.constant 680 : index
    %c0_23 = arith.constant 0 : index
    %45 = vector.load %arg2[%c680, %c0_23] : memref<728x128xf32, #tpu.memory_space<vmem>>, vector<4x64xf32>
    %46 = vector.shape_cast %45 : vector<4x64xf32> to vector<4x1x64xf32>
    %47 = vector.broadcast %44 : vector<4x8x1xf32> to vector<4x8x64xf32>
    %48 = vector.broadcast %46 : vector<4x1x64xf32> to vector<4x8x64xf32>
    %49 = arith.addf %47, %48 : vector<4x8x64xf32>
    %50 = arith.negf %49 : vector<4x8x64xf32>
    %51 = math.exp %50 : vector<4x8x64xf32>
    %cst_24 = arith.constant 1.000000e+00 : f32
    %52 = vector.broadcast %cst_24 : f32 to vector<4x8x64xf32>
    %53 = arith.addf %52, %51 : vector<4x8x64xf32>
    %54 = arith.divf %52, %53 : vector<4x8x64xf32>
    %55 = arith.mulf %54, %38 : vector<4x8x64xf32>
    %cst_25 = arith.constant dense<0.000000e+00> : vector<4x64xf32>
    %56 = vector.multi_reduction <add>, %55, %cst_25 [1] : vector<4x8x64xf32> to vector<4x64xf32>
    %cst_26 = arith.constant dense<0xFF800000> : vector<4x64xf32>
    %57 = vector.multi_reduction <maximumf>, %38, %cst_26 [1] : vector<4x8x64xf32> to vector<4x64xf32>
    %58 = tpu.concatenate %56, %57 in 1 : vector<4x64xf32>, vector<4x64xf32> -> vector<4x128xf32>
    %c96 = arith.constant 96 : index
    %c0_27 = arith.constant 0 : index
    %59 = vector.load %arg2[%c96, %c0_27] : memref<728x128xf32, #tpu.memory_space<vmem>>, vector<128x64xf32>
    %cst_28 = arith.constant dense<0.000000e+00> : vector<4x64xf32>
    %60 = tpu.matmul %58, %59, %cst_28 {dimension_numbers = #tpu.dot_dimension_numbers<[1], [0], [0], [1], [0, 0, 1, 1], [], []>} : vector<4x128xf32>, vector<128x64xf32>, vector<4x64xf32> -> vector<4x64xf32>
    %c688 = arith.constant 688 : index
    %c0_29 = arith.constant 0 : index
    %61 = vector.load %arg2[%c688, %c0_29] : memref<728x128xf32, #tpu.memory_space<vmem>>, vector<4x64xf32>
    %62 = arith.addf %60, %61 : vector<4x64xf32>
    %cst_30 = arith.constant 0.000000e+00 : f32
    %63 = vector.broadcast %cst_30 : f32 to vector<4x64xf32>
    %64 = arith.maximumf %62, %63 : vector<4x64xf32>
    %c224 = arith.constant 224 : index
    %c0_31 = arith.constant 0 : index
    %65 = vector.load %arg2[%c224, %c0_31] : memref<728x128xf32, #tpu.memory_space<vmem>>, vector<64x128xf32>
    %cst_32 = arith.constant dense<0.000000e+00> : vector<4x128xf32>
    %66 = tpu.matmul %64, %65, %cst_32 {dimension_numbers = #tpu.dot_dimension_numbers<[1], [0], [0], [1], [0, 0, 1, 1], [], []>} : vector<4x64xf32>, vector<64x128xf32>, vector<4x128xf32> -> vector<4x128xf32>
    %c696 = arith.constant 696 : index
    %c0_33 = arith.constant 0 : index
    %67 = vector.load %arg2[%c696, %c0_33] : memref<728x128xf32, #tpu.memory_space<vmem>>, vector<4x128xf32>
    %68 = arith.addf %66, %67 : vector<4x128xf32>
    %69 = vector.extract_strided_slice %68 {offsets = [0, 0], sizes = [2, 128], strides = [1, 1]} : vector<4x128xf32> to vector<2x128xf32>
    %70 = vector.extract_strided_slice %68 {offsets = [2, 0], sizes = [2, 128], strides = [1, 1]} : vector<4x128xf32> to vector<2x128xf32>
    %71 = arith.addf %69, %70 : vector<2x128xf32>
    %c288 = arith.constant 288 : index
    %c0_34 = arith.constant 0 : index
    %72 = vector.load %arg2[%c288, %c0_34] : memref<728x128xf32, #tpu.memory_space<vmem>>, vector<128x64xf32>
    %cst_35 = arith.constant dense<0.000000e+00> : vector<2x64xf32>
    %73 = tpu.matmul %71, %72, %cst_35 {dimension_numbers = #tpu.dot_dimension_numbers<[1], [0], [0], [1], [0, 0, 1, 1], [], []>} : vector<2x128xf32>, vector<128x64xf32>, vector<2x64xf32> -> vector<2x64xf32>
    %c704 = arith.constant 704 : index
    %c0_36 = arith.constant 0 : index
    %74 = vector.load %arg2[%c704, %c0_36] : memref<728x128xf32, #tpu.memory_space<vmem>>, vector<1x64xf32>
    %75 = vector.broadcast %74 : vector<1x64xf32> to vector<2x64xf32>
    %76 = arith.addf %73, %75 : vector<2x64xf32>
    %cst_37 = arith.constant 0.000000e+00 : f32
    %77 = vector.broadcast %cst_37 : f32 to vector<2x64xf32>
    %78 = arith.maximumf %76, %77 : vector<2x64xf32>
    %c712 = arith.constant 712 : index
    %c0_38 = arith.constant 0 : index
    %79 = vector.load %arg2[%c712, %c0_38] : memref<728x128xf32, #tpu.memory_space<vmem>>, vector<1x64xf32>
    %80 = vector.broadcast %79 : vector<1x64xf32> to vector<2x64xf32>
    %81 = arith.mulf %78, %80 : vector<2x64xf32>
    %cst_39 = arith.constant dense<0.000000e+00> : vector<2xf32>
    %82 = vector.multi_reduction <add>, %81, %cst_39 [1] : vector<2x64xf32> to vector<2xf32>
    %83 = vector.shape_cast %82 : vector<2xf32> to vector<2x1xf32>
    %c720 = arith.constant 720 : index
    %c0_40 = arith.constant 0 : index
    %84 = vector.load %arg2[%c720, %c0_40] : memref<728x128xf32, #tpu.memory_space<vmem>>, vector<1x128xf32>
    %85 = vector.broadcast %83 : vector<2x1xf32> to vector<2x128xf32>
    %86 = vector.broadcast %84 : vector<1x128xf32> to vector<2x128xf32>
    %87 = arith.addf %85, %86 : vector<2x128xf32>
    %c0_41 = arith.constant 0 : index
    %c0_42 = arith.constant 0 : index
    %88 = vector.load %arg3[%c0_41, %c0_42] : memref<2x128xf32, #tpu.memory_space<vmem>>, vector<2x128xf32>
    tpu.vector_store %arg3[%c0_41, %c0_42], %87 {strides = array<i32>} : memref<2x128xf32, #tpu.memory_space<vmem>>, vector<2x128xf32>,
    return
  }
}

</mosaic_0001>

<bundles_post_ra>
// kernel: forward.1
= control target key start
LH: loop header
LB: loop body
LE: loop exit
PB: predicated region body
PF: predicated region fallthrough
CT: control target
= control target key end

     0   :  { %8 = vsyncpa [#allocation3], 0  ;;  %s972_s0 = inlined_call_operand.hbm [shape: f32[32,32], index: 0, kind: input, shape index: {}]   ;;  %s973_s1 = inlined_call_operand.hbm [shape: f32[32,32], index: 1, kind: input, shape index: {}]   ;;  %s974_s2 = inlined_call_operand.hbm [shape: f32[728,128], index: 2, kind: input, shape index: {}]   ;;  %s975_s3 = inlined_call_operand.vmem [shape: f32[2,128], index: 3, kind: output, shape index: {}]  }
   0x1   :  { %9 = vsyncpa [#allocation5], 0  ;;  %s27_s14 = sshll.u32 %s973_s1, 4  ;;  %s825_s15 = smov [#allocation4]   ;;  %s28_s14 = int_to_ptr.hbm [resolvable:$true] %s27_s14 }
   0x2   :  { %s29_s16 = sshll.u32 %s825_s15, 4  ;;  %s14_s19 = sshll.u32 %s972_s0, 4  ;;  %s30_s16 = int_to_ptr.vmem [resolvable:$true] %s29_s16  ;;  %s15_s19 = int_to_ptr.hbm [resolvable:$true] %s14_s19 }
   0x3   :  { %s826_s20 = smov 128   ;;  %s827_s21 = smov 8  }
   0x4   :  { %35 = dma.hbm_to_vmem [thread:$0]  %s28_s14, 512, %s30_s16, [#allocation5], %s826_s20, %s826_s20, %s827_s21  }
   0x5   :  { %s828_s22 = smov [#allocation2]   ;;  %s40_s26 = sshll.u32 %s974_s2, 4  ;;  %s41_s26 = int_to_ptr.hbm [resolvable:$true] %s40_s26 }
   0x6   :  { %s16_s23 = sshll.u32 %s828_s22, 4  ;;  %s829_s1 = smov [#allocation6]   ;;  %s17_s23 = int_to_ptr.vmem [resolvable:$true] %s16_s23 }
   0x7   :  { %22 = dma.hbm_to_vmem [thread:$0]  %s15_s19, 512, %s17_s23, [#allocation3], %s826_s20, %s826_s20, %s827_s21  }
   0x8   :  { %s42_s27 = sshll.u32 %s829_s1, 4  ;;  %s43_s27 = int_to_ptr.vmem [resolvable:$true] %s42_s27 }
   0x9   :  { %48 = dma.hbm_to_vmem [thread:$0]  %s41_s26, 11648, %s43_s27, [#allocation5], %s826_s20, %s826_s20, %s827_s21  }
   0xa   :  { %821 = dma.done.wait [#allocation3], 512  }
   0xb   :  { %822 = vsyncadd [#allocation3], 4294966784 }
   0xc   :  { %823 = dma.done.wait [#allocation5], 12160  }
   0xd   :  { %824 = vsyncadd [#allocation5], 4294955136  ;;  %v72_v0 = vld [vmem:[#allocation6 + $0x18] sm:$0xff]  ;;  %v71_v1 = vld [vmem:[#allocation6 + $0x10] sm:$0xff]  ;;  %s830_s0 = smov 64   ;;  %vm73_vm0 = vcmask 261120  }
   0xe   :  { %98 = vmatpush.msra.mxu0 %v72_v0  ;;  %v70_v2 = vld [vmem:[#allocation6 + $0x8] sm:$0xff]  ;;  %v164_v3 = vld [vmem:[#allocation6 + $0x1c0] sm:$0xff]  ;;  %v166_v5 = vld [vmem:[#allocation6 + $0x1d0] sm:$0xff]  ;;  %vm236_vm1 = vcmask 523264   ;;  %vm554_vm2 = vcmask 1041409   ;;  %vm556_vm3 = vcmask 1042434  }
   0xf   :  { %v69_v4 = vld [vmem:[#allocation6] sm:$0xff]  ;;  %172 = vrot.lane.b32.xlu0 %v164_v3, %s830_s0  ;;  %176 = vrot.lane.b32.xlu1 %v166_v5, %s830_s0  ;;  %v165_v7 = vld [vmem:[#allocation6 + $0x1c8] sm:$0xff]  ;;  %v167_v8 = vld [vmem:[#allocation6 + $0x1d8] sm:$0xff]  ;;  %vm558_vm4 = vcmask 1043459  }
  0x10   :  { %99 = vmatpush.msra.mxu0 %v71_v1  ;;  %v65_v6 = vld [vmem:[#allocation4] sm:$0xff]  ;;  %v66_v9 = vld [vmem:[#allocation4 + $0x8] sm:$0xff]  ;;  %v67_v10 = vld [vmem:[#allocation4 + $0x10] sm:$0xff] }
  0x11   :  { %v68_v11 = vld [vmem:[#allocation4 + $0x18] sm:$0xff]  ;;  %v872_v28 = vld [vmem:[#allocation2] sm:$0xff]  ;;  %v876_v29 = vld [vmem:[#allocation2 + $0x8] sm:$0xff] }
  0x12   :  { %100 = vmatpush.msra.mxu0 %v70_v2  ;;  %v880_v30 = vld [vmem:[#allocation2 + $0x10] sm:$0xff]  ;;  %v884_v31 = vld [vmem:[#allocation2 + $0x18] sm:$0xff]  ;;  %v233_v34 = vld [vmem:[#allocation6 + $0x48] sm:$0xff] }
  0x13   :  { %v235_v32 = vld [vmem:[#allocation6 + $0x58] sm:$0xff]  ;;  %v234_v33 = vld [vmem:[#allocation6 + $0x50] sm:$0xff]  ;;  %v232_v35 = vld [vmem:[#allocation6 + $0x40] sm:$0xff] }
  0x14   :  { %101 = vmatpush.msra.mxu0 %v69_v4  ;;  %257 = vmatpush.msra.mxu2 %v235_v32  ;;  %v231_v36 = vld [vmem:[#allocation6 + $0x38] sm:$0xff]  ;;  %v230_v37 = vld [vmem:[#allocation6 + $0x30] sm:$0xff]  ;;  %v229_v38 = vld [vmem:[#allocation6 + $0x28] sm:$0xff] }
  0x15   :  { %702 = vmatmul.msk.f32.vlgmr.msra.gmra.mxu0 %vm73_vm0, %v65_v6  ;;  %v228_v39 = vld [vmem:[#allocation6 + $0x20] sm:$0xff]  ;;  %v316_v45 = vld [vmem:[#allocation6 + $0x248] sm:$0xff]  ;;  %v317_v46 = vld [vmem:[#allocation6 + $0x250] sm:$0xff] }
  0x16   :  { %258 = vmatpush.msra.mxu2 %v234_v33  ;;  %v115_v40 = vld [vmem:[#allocation6 + $0x1a0] sm:$0xff]  ;;  %v116_v50 = vld [vmem:[#allocation6 + $0x1a8] sm:$0xff]  ;;  %v318_v56 = vld [vmem:[#allocation6 + $0x258] sm:$0xff] }
  0x17   :  { %174 = vrot.lane.b32.xlu0 %v165_v7, %s830_s0  ;;  %178 = vrot.lane.b32.xlu1 %v167_v8, %s830_s0  ;;  %v315_v47 = vld [vmem:[#allocation6 + $0x240] sm:$0xff]  ;;  %v213_v59 = vld [vmem:[#allocation6 + $0x1e8] sm:$0xff]  ;;  %v117_v61 = vld [vmem:[#allocation6 + $0x1b0] sm:$0xff] }
  0x18   :  { %259 = vmatpush.msra.mxu2 %v233_v34  ;;  %v212_v48 = vld [vmem:[#allocation6 + $0x1e0] sm:$0xff]  ;;  %v221_v62 = vld [vmem:[#allocation6 + $0x208] sm:$0xff]  ;;  %v214_v5 = vld [vmem:[#allocation6 + $0x1f0] sm:$0xff] }
  0x19   :  { %v220_v51 = vld [vmem:[#allocation6 + $0x200] sm:$0xff]  ;;  %v118_v7 = vld [vmem:[#allocation6 + $0x1b8] sm:$0xff]  ;;  %v222_v8 = vld [vmem:[#allocation6 + $0x210] sm:$0xff] }
  0x1a   :  { %260 = vmatpush.msra.mxu2 %v232_v35 }
  0x1c   :  { %261 = vmatpush.msra.mxu2 %v231_v36 }
  0x1d   :  { %703 = vmatmul.msk.f32.gmra.mxu0 %vm73_vm0, %v66_v9 }
  0x1e   :  { %262 = vmatpush.msra.mxu2 %v230_v37 }
  0x20   :  { %263 = vmatpush.msra.mxu2 %v229_v38 }
  0x22   :  { %264 = vmatpush.msra.mxu2 %v228_v39 }
  0x25   :  { %704 = vmatmul.msk.f32.gmra.mxu0 %vm73_vm0, %v67_v10 }
  0x2d   :  { %705 = vmatmul.msk.f32.gmra.mxu0 %vm73_vm0, %v68_v11 }
  0x81   :  { %v173_v12 = vpop.permute.xlu0 %172  ;;  %v177_v20 = vpop.permute.xlu1 %176 }
  0x89   :  { %v175_v16 = vpop.permute.xlu0 %174  ;;  %v179_v24 = vpop.permute.xlu1 %178 }
  0x92   :  { %v103_v13 = vpop.f32.mrf.mxu0 }
  0x93   :  { %v184_v14 = vadd.f32 %v173_v12, %v103_v13 }
  0x95   :  { %v188_v15 = vmax.f32 %v184_v14, 0.0 }
  0x97   :  { %196 = vrot.lane.b32.xlu2 %v188_v15, %s830_s0  ;;  %v215_v15 = vld [vmem:[#allocation6 + $0x1f8] sm:$0xff] }
  0x9a   :  { %v106_v17 = vpop.f32.mrf.mxu0 }
  0x9b   :  { %v185_v18 = vadd.f32 %v175_v16, %v106_v17 }
  0x9d   :  { %v189_v19 = vmax.f32 %v185_v18, 0.0 }
  0x9f   :  { %198 = vrot.lane.b32.xlu2 %v189_v19, %s830_s0 }
  0xa2   :  { %v109_v21 = vpop.f32.mrf.mxu0 }
  0xa3   :  { %v186_v22 = vadd.f32 %v177_v20, %v109_v21 }
  0xa5   :  { %v190_v23 = vmax.f32 %v186_v22, 0.0 }
  0xa7   :  { %200 = vrot.lane.b32.xlu0 %v190_v23, %s830_s0  ;;  %323 = vrot.lane.b32.xlu2 %v315_v47, %s830_s0  ;;  %v279_v47 = vld [vmem:[#allocation6 + $0x228] sm:$0xff] }
  0xaa   :  { %v112_v25 = vpop.f32.mrf.mxu0 }
  0xab   :  { %v187_v26 = vadd.f32 %v179_v24, %v112_v25  ;;  %143 = vmatpush.msra.mxu1 %v112_v25 }
  0xad   :  { %v191_v27 = vmax.f32 %v187_v26, 0.0  ;;  %144 = vmatpush.msra.mxu1 %v109_v21 }
  0xaf   :  { %202 = vrot.lane.b32.xlu1 %v191_v27, %s830_s0  ;;  %145 = vmatpush.msra.mxu1 %v106_v17  ;;  %v223_v17 = vld [vmem:[#allocation6 + $0x218] sm:$0xff] }
  0xb0   :  { %325 = vrot.lane.b32.xlu0 %v316_v45, %s830_s0  ;;  %329 = vrot.lane.b32.xlu2 %v318_v56, %s830_s0  ;;  %v363_v45 = vld [vmem:[#allocation6 + $0x260] sm:$0xff]  ;;  %v280_v56 = vld [vmem:[#allocation6 + $0x230] sm:$0xff] }
  0xb1   :  { %146 = vmatpush.msra.mxu1 %v103_v13 }
  0xb2   :  { %706 = vmatmul.msk.f32.vlgmr.msra.gmra.mxu1 %vm73_vm0, %v872_v28 }
  0xb7   :  { %327 = vrot.lane.b32.xlu1 %v317_v46, %s830_s0 }
  0xba   :  { %707 = vmatmul.msk.f32.gmra.mxu1 %vm73_vm0, %v876_v29 }
  0xc2   :  { %708 = vmatmul.msk.f32.gmra.mxu1 %vm73_vm0, %v880_v30 }
  0xca   :  { %709 = vmatmul.msk.f32.gmra.mxu1 %vm73_vm0, %v884_v31 }
  0xf1   :  { %v197_v43 = vpop.permute.xlu2 %196 }
  0xf9   :  { %v199_v58 = vpop.permute.xlu2 %198 }
 0x101   :  { %v324_v20 = vpop.permute.xlu2 %323 }
 0x10a   :  { %v330_v36 = vpop.permute.xlu2 %329 }
 0x119   :  { %v201_v4 = vpop.permute.xlu0 %200 }
 0x121   :  { %v203_v14 = vpop.permute.xlu1 %202 }
 0x122   :  { %v326_v24 = vpop.permute.xlu0 %325 }
 0x129   :  { %v328_v32 = vpop.permute.xlu1 %327 }
 0x12f   :  { %v148_v41 = vpop.f32.mrf.mxu1 }
 0x130   :  { %v149_v42 = vadd.f32 %v148_v41, %v115_v40  ;;  %v278_v40 = vld [vmem:[#allocation6 + $0x220] sm:$0xff] }
 0x132   :  { %v160_v44 = vmax.f32 %v149_v42, 0.0 }
 0x134   :  { %v208_v49 = vadd.f32 %v197_v43, %v160_v44 }
 0x136   :  { %v216_v52 = vmul.f32 %v212_v48, %v208_v49  ;;  %v371_v48 = vld [vmem:[#allocation6 + $0x280] sm:$0xff] }
 0x137   :  { %v151_v53 = vpop.f32.mrf.mxu1 }
 0x138   :  { %v152_v54 = vadd.f32 %v151_v53, %v116_v50  ;;  %v224_v55 = vadd.f32 %v220_v51, %v216_v52 }
 0x13a   :  { %v161_v57 = vmax.f32 %v152_v54, 0.0  ;;  %710 = vmatmul.msk.f32.vlgmr.msra.gmra.mxu2 %vm236_vm1, %v224_v55 }
 0x13c   :  { %v209_v60 = vadd.f32 %v199_v58, %v161_v57  ;;  %v372_v57 = vld [vmem:[#allocation6 + $0x288] sm:$0xff] }
 0x13e   :  { %v217_v63 = vmul.f32 %v213_v59, %v209_v60 }
 0x13f   :  { %v154_v0 = vpop.f32.mrf.mxu1 }
 0x140   :  { %v155_v1 = vadd.f32 %v154_v0, %v117_v61  ;;  %v225_v2 = vadd.f32 %v221_v62, %v217_v63 }
 0x142   :  { %v162_v3 = vmax.f32 %v155_v1, 0.0  ;;  %711 = vmatmul.msk.f32.gmra.mxu2 %vm236_vm1, %v225_v2  ;;  %v365_v2 = vld [vmem:[#allocation6 + $0x270] sm:$0xff] }
 0x144   :  { %v210_v6 = vadd.f32 %v201_v4, %v162_v3 }
 0x146   :  { %v218_v9 = vmul.f32 %v214_v5, %v210_v6 }
 0x147   :  { %v157_v10 = vpop.f32.mrf.mxu1 }
 0x148   :  { %v158_v11 = vadd.f32 %v157_v10, %v118_v7  ;;  %v226_v12 = vadd.f32 %v222_v8, %v218_v9  ;;  %v281_v7 = vld [vmem:[#allocation6 + $0x238] sm:$0xff]  ;;  %v373_v8 = vld [vmem:[#allocation6 + $0x290] sm:$0xff] }
 0x14a   :  { %v163_v13 = vmax.f32 %v158_v11, 0.0  ;;  %712 = vmatmul.msk.f32.gmra.mxu2 %vm236_vm1, %v226_v12 }
 0x14c   :  { %v211_v16 = vadd.f32 %v203_v14, %v163_v13 }
 0x14e   :  { %v219_v18 = vmul.f32 %v215_v15, %v211_v16 }
 0x150   :  { %v227_v19 = vadd.f32 %v223_v17, %v219_v18 }
 0x152   :  { %713 = vmatmul.msk.f32.gmra.mxu2 %vm236_vm1, %v227_v19 }
 0x1bd   :  { %v266_v21 = vpop.f32.mrf.mxu2 }
 0x1be   :  { %v335_v22 = vadd.f32 %v324_v20, %v266_v21  ;;  %v366_v20 = vld [vmem:[#allocation6 + $0x278] sm:$0xff] }
 0x1c0   :  { %v339_v23 = vmax.f32 %v335_v22, 0.0 }
 0x1c2   :  { %347 = vrot.lane.b32.xlu0 %v339_v23, %s830_s0 }
 0x1c5   :  { %v269_v25 = vpop.f32.mrf.mxu2 }
 0x1c6   :  { %v336_v26 = vadd.f32 %v326_v24, %v269_v25 }
 0x1c8   :  { %v340_v27 = vmax.f32 %v336_v26, 0.0 }
 0x1ca   :  { %349 = vrot.lane.b32.xlu1 %v340_v27, %s830_s0 }
 0x1cd   :  { %v272_v33 = vpop.f32.mrf.mxu2 }
 0x1ce   :  { %v337_v34 = vadd.f32 %v328_v32, %v272_v33 }
 0x1d0   :  { %v341_v35 = vmax.f32 %v337_v34, 0.0 }
 0x1d2   :  { %351 = vrot.lane.b32.xlu2 %v341_v35, %s830_s0 }
 0x1d5   :  { %v275_v37 = vpop.f32.mrf.mxu2 }
 0x1d6   :  { %v338_v38 = vadd.f32 %v330_v36, %v275_v37  ;;  %294 = vmatpush.msra.mxu3 %v275_v37 }
 0x1d8   :  { %v342_v39 = vmax.f32 %v338_v38, 0.0  ;;  %295 = vmatpush.msra.mxu3 %v272_v33 }
 0x1da   :  { %353 = vrot.lane.b32.xlu0 %v342_v39, %s830_s0  ;;  %296 = vmatpush.msra.mxu3 %v269_v25  ;;  %v374_v25 = vld [vmem:[#allocation6 + $0x298] sm:$0xff] }
 0x1dc   :  { %297 = vmatpush.msra.mxu3 %v266_v21 }
 0x1dd   :  { %714 = vmatmul.msk.f32.vlgmr.msra.gmra.mxu3 %vm73_vm0, %v872_v28  ;;  %v729_v28 = vld [vmem:[#allocation6 + $0x2a0] ss:$0 sm:$0xff] }
 0x1e5   :  { %715 = vmatmul.msk.f32.gmra.mxu3 %vm73_vm0, %v876_v29 }
 0x1ed   :  { %716 = vmatmul.msk.f32.gmra.mxu3 %vm73_vm0, %v880_v30 }
 0x1f5   :  { %717 = vmatmul.msk.f32.gmra.mxu3 %vm73_vm0, %v884_v31  ;;  %v364_v31 = vld [vmem:[#allocation6 + $0x268] sm:$0xff] }
 0x22c   :  { %v352_v1 = vpop.permute.xlu2 %351 }
 0x234   :  { %v348_v44 = vpop.permute.xlu0 %347 }
 0x23c   :  { %v350_v53 = vpop.permute.xlu1 %349 }
 0x24c   :  { %v354_v18 = vpop.permute.xlu0 %353 }
 0x260   :  { %v299_v41 = vpop.f32.mrf.mxu3 }
 0x261   :  { %v300_v42 = vadd.f32 %v299_v41, %v278_v40 }
 0x263   :  { %v311_v43 = vmax.f32 %v300_v42, 0.0 }
 0x265   :  { %v359_v46 = vadd.f32 %v348_v44, %v311_v43 }
 0x267   :  { %v367_v49 = vmul.f32 %v363_v45, %v359_v46 }
 0x268   :  { %v302_v50 = vpop.f32.mrf.mxu3 }
 0x269   :  { %v303_v51 = vadd.f32 %v302_v50, %v279_v47  ;;  %v908_v29 = vadd.f32 %v371_v48, %v367_v49 }
 0x26b   :  { %v312_v52 = vmax.f32 %v303_v51, 0.0  ;;  %v381_v30 = vmul.f32 %v729_v28, %v908_v29  ;;  %v522_v3 = vsel %vm236_vm1, %v908_v29, -inf }
 0x26c   :  { %v523_v10 = vrot.slane %v522_v3, 4 }
 0x26d   :  { %v360_v54 = vadd.f32 %v350_v53, %v312_v52  ;;  %v385_v55 = vsel %vm236_vm1, %v381_v30, 0.0 }
 0x26e   :  { %386 = vadd.xlane.f32.xlu1 %v385_v55  ;;  %v524_v19 = vmax.f32 %v522_v3, %v523_v10  ;;  %v586_v3 = vld [vmem:[#allocation6 + $0xd0] sm:$0xff] }
 0x26f   :  { %v368_v58 = vmul.f32 %v364_v31, %v360_v54  ;;  %v397_v31 = vld [vmem:[#allocation6 + $0x2a8] sm:$0xf] }
 0x270   :  { %v305_v59 = vpop.f32.mrf.mxu3  ;;  %v525_v32 = vrot.slane %v524_v19, 2  ;;  %v402_v54 = vperm.slane %v397_v31, 0  ;;  %v401_v10 = vrot.slane %v397_v31, 3 }
 0x271   :  { %v306_v60 = vadd.f32 %v305_v59, %v280_v56  ;;  %v912_v61 = vadd.f32 %v372_v57, %v368_v58  ;;  %v399_v57 = vrot.slane %v397_v31, 1 }
 0x272   :  { %v526_v39 = vmax.f32 %v524_v19, %v525_v32 }
 0x273   :  { %v313_v62 = vmax.f32 %v306_v60, 0.0  ;;  %v382_v63 = vmul.f32 %v729_v28, %v912_v61  ;;  %v529_v0 = vsel %vm236_vm1, %v912_v61, -inf  ;;  %v403_v59 = vperm.slane %v399_v57, 0 }
 0x274   :  { %v530_v6 = vrot.slane %v529_v0, 4  ;;  %v527_v45 = vrot.slane %v526_v39, 1 }
 0x275   :  { %v361_v4 = vadd.f32 %v352_v1, %v313_v62  ;;  %v388_v5 = vsel %vm236_vm1, %v382_v63, 0.0  ;;  %v400_v63 = vrot.slane %v397_v31, 2 }
 0x276   :  { %389 = vadd.xlane.f32.xlu2 %v388_v5  ;;  %v531_v14 = vmax.f32 %v529_v0, %v530_v6  ;;  %v528_v50 = vmax.f32 %v526_v39, %v527_v45  ;;  %v587_v0 = vld [vmem:[#allocation6 + $0xd8] sm:$0xff]  ;;  %v585_v6 = vld [vmem:[#allocation6 + $0xc8] sm:$0xff] }
 0x277   :  { %v369_v9 = vmul.f32 %v365_v2, %v361_v4  ;;  %589 = vmatpush.msrb.mxu0 %v587_v0  ;;  %v404_v5 = vperm.slane %v400_v63, 0 }
 0x278   :  { %v308_v11 = vpop.f32.mrf.mxu3  ;;  %v532_v24 = vrot.slane %v531_v14, 2 }
 0x279   :  { %v309_v12 = vadd.f32 %v308_v11, %v281_v7  ;;  %v920_v13 = vadd.f32 %v373_v8, %v369_v9  ;;  %590 = vmatpush.msrb.mxu0 %v586_v3  ;;  %v584_v7 = vld [vmem:[#allocation6 + $0xc0] sm:$0xff]  ;;  %v583_v11 = vld [vmem:[#allocation6 + $0xb8] sm:$0xff] }
 0x27a   :  { %v533_v35 = vmax.f32 %v531_v14, %v532_v24 }
 0x27b   :  { %v314_v15 = vmax.f32 %v309_v12, 0.0  ;;  %v383_v16 = vmul.f32 %v729_v28, %v920_v13  ;;  %v536_v17 = vsel %vm236_vm1, %v920_v13, -inf  ;;  %591 = vmatpush.msrb.mxu0 %v585_v6  ;;  %v615_v6 = vld [vmem:[#allocation6 + $0x108] sm:$0xff] }
 0x27c   :  { %v537_v21 = vrot.slane %v536_v17, 4  ;;  %v534_v42 = vrot.slane %v533_v35, 1 }
 0x27d   :  { %v362_v22 = vadd.f32 %v354_v18, %v314_v15  ;;  %v391_v23 = vsel %vm236_vm1, %v383_v16, 0.0  ;;  %592 = vmatpush.msrb.mxu0 %v584_v7  ;;  %v582_v15 = vld [vmem:[#allocation6 + $0xb0] sm:$0xff]  ;;  %v581_v16 = vld [vmem:[#allocation6 + $0xa8] sm:$0xff] }
 0x27e   :  { %392 = vadd.xlane.f32.xlu0 %v391_v23  ;;  %v538_v26 = vmax.f32 %v536_v17, %v537_v21  ;;  %v535_v47 = vmax.f32 %v533_v35, %v534_v42  ;;  %v580_v21 = vld [vmem:[#allocation6 + $0xa0] sm:$0xff]  ;;  %v579_v23 = vld [vmem:[#allocation6 + $0x98] sm:$0xff]  ;;  %v577_v35 = vld [vmem:[#allocation6 + $0x88] sm:$0xff] }
 0x27f   :  { %v370_v27 = vmul.f32 %v366_v20, %v362_v22  ;;  %593 = vmatpush.msrb.mxu0 %v583_v11  ;;  %v405_v20 = vperm.slane %v401_v10, 0  ;;  %v614_v10 = vld [vmem:[#allocation6 + $0x100] sm:$0xff] }
 0x280   :  { %v539_v33 = vrot.slane %v538_v26, 2  ;;  %v565_v52 = vsel %vm554_vm2, %v535_v47, %v528_v50  ;;  %v574_v50 = vld [vmem:[#allocation6 + $0x70] sm:$0xff] }
 0x281   :  { %v926_v34 = vadd.f32 %v374_v25, %v370_v27  ;;  %594 = vmatpush.msrb.mxu0 %v582_v15  ;;  %v578_v27 = vld [vmem:[#allocation6 + $0x90] sm:$0xff] }
 0x282   :  { %v540_v37 = vmax.f32 %v538_v26, %v539_v33 }
 0x283   :  { %v384_v36 = vmul.f32 %v729_v28, %v926_v34  ;;  %v543_v38 = vsel %vm236_vm1, %v926_v34, -inf  ;;  %595 = vmatpush.msrb.mxu0 %v581_v16  ;;  %v613_v16 = vld [vmem:[#allocation6 + $0xf8] sm:$0xff] }
 0x284   :  { %v544_v40 = vrot.slane %v543_v38, 4  ;;  %v541_v44 = vrot.slane %v540_v37, 1 }
 0x285   :  { %v394_v41 = vsel %vm236_vm1, %v384_v36, 0.0  ;;  %596 = vmatpush.msrb.mxu0 %v580_v21  ;;  %v612_v21 = vld [vmem:[#allocation6 + $0xf0] sm:$0xff] }
 0x286   :  { %395 = vadd.xlane.f32.xlu2 %v394_v41  ;;  %v545_v43 = vmax.f32 %v543_v38, %v544_v40  ;;  %v542_v49 = vmax.f32 %v540_v37, %v541_v44  ;;  %v576_v40 = vld [vmem:[#allocation6 + $0x80] sm:$0xff]  ;;  %v575_v44 = vld [vmem:[#allocation6 + $0x78] sm:$0xff] }
 0x287   :  { %597 = vmatpush.msrb.mxu0 %v579_v23 }
 0x288   :  { %v546_v46 = vrot.slane %v545_v43, 2  ;;  %v566_v30 = vsel %vm556_vm3, %v542_v49, %v565_v52 }
 0x289   :  { %598 = vmatpush.msrb.mxu0 %v578_v27  ;;  %v611_v27 = vld [vmem:[#allocation6 + $0xe8] sm:$0xff] }
 0x28a   :  { %v547_v48 = vmax.f32 %v545_v43, %v546_v46 }
 0x28b   :  { %599 = vmatpush.msrb.mxu0 %v577_v35 }
 0x28c   :  { %v548_v28 = vrot.slane %v547_v48, 1 }
 0x28d   :  { %600 = vmatpush.msrb.mxu0 %v576_v40 }
 0x28e   :  { %v549_v51 = vmax.f32 %v547_v48, %v548_v28 }
 0x28f   :  { %601 = vmatpush.msrb.mxu0 %v575_v44 }
 0x290   :  { %v567_v53 = vsel %vm558_vm4, %v549_v51, %v566_v30  ;;  %v573_v30 = vld [vmem:[#allocation6 + $0x68] sm:$0xff] }
 0x291   :  { %568 = vrot.lane.b32.xlu1 %v567_v53, %s830_s0  ;;  %602 = vmatpush.msrb.mxu0 %v574_v50 }
 0x293   :  { %603 = vmatpush.msrb.mxu0 %v573_v30 }
 0x2e1   :  { %v387_v55 = vpop.xlane.xlu1 %386 }
 0x2e2   :  { %v410_v56 = vadd.f32 %v402_v54, %v387_v55 }
 0x2e4   :  { %v718_v58 = vmul.f32 -1.442695, %v410_v56 }
 0x2e6   :  { %733 = vpow2.f32 %v718_v58  ;;  %v572_v58 = vld [vmem:[#allocation6 + $0x60] sm:$0xff] }
 0x2e7   :  { %604 = vmatpush.msrb.mxu0 %v572_v58  ;;  %v610_v58 = vld [vmem:[#allocation6 + $0xe0] sm:$0xff] }
 0x2e9   :  { %v390_v60 = vpop.xlane.xlu2 %389 }
 0x2ea   :  { %v411_v62 = vadd.f32 %v403_v59, %v390_v60 }
 0x2ec   :  { %v734_v1 = vpop.eup %733  ;;  %v719_v2 = vmul.f32 -1.442695, %v411_v62 }
 0x2ed   :  { %v936_v4 = vadd.f32 1.0, %v734_v1  ;;  %v617_v1 = vld [vmem:[#allocation6 + $0x118] sm:$0xff] }
 0x2ee   :  { %735 = vpow2.f32 %v719_v2  ;;  %v616_v2 = vld [vmem:[#allocation6 + $0x110] sm:$0xff]  ;;  %630 = vmatpush.msrb.mxu1 %v617_v1 }
 0x2ef   :  { %737 = vrcp.f32 %v936_v4  ;;  %v441_v41 = vand.u32 2147483648, %v936_v4  ;;  %vm435_vm6 = vweird.f32 %v936_v4  ;;  %v439_v42 = vand.u32 2147483647, %v936_v4  ;;  %v656_v1 = vld [vmem:[#allocation6 + $0x170] sm:$0xff] }
 0x2f0   :  { %631 = vmatpush.msrb.mxu1 %v616_v2  ;;  %v655_v2 = vld [vmem:[#allocation6 + $0x168] sm:$0xff] }
 0x2f1   :  { %v393_v8 = vpop.xlane.xlu0 %392  ;;  %v442_v28 = vor.u32 1.1754944e-38, %v441_v41  ;;  %vm440_vm9 = vcmp.eq.f32.partialorder %v439_v42, 8.507059e+37 }
 0x2f2   :  { %v412_v9 = vadd.f32 %v404_v5, %v393_v8  ;;  %632 = vmatpush.msrb.mxu1 %v615_v6  ;;  %v651_v6 = vld [vmem:[#allocation6 + $0x148] sm:$0xff] }
 0x2f4   :  { %v736_v12 = vpop.eup %735  ;;  %v720_v14 = vmul.f32 -1.442695, %v412_v9  ;;  %633 = vmatpush.msrb.mxu1 %v614_v10 }
 0x2f5   :  { %v738_v17 = vpop.eup %737  ;;  %v427_v18 = vadd.f32 1.0, %v736_v12 }
 0x2f6   :  { %v431_v19 = vmul.f32 %v738_v17, %v936_v4  ;;  %739 = vpow2.f32 %v720_v14  ;;  %vm436_vm5 = vweird.f32 %v738_v17  ;;  %634 = vmatpush.msrb.mxu1 %v613_v16 }
 0x2f7   :  { %741 = vrcp.f32 %v427_v18  ;;  %vm946_vm7 = vmor %vm435_vm6, %vm436_vm5  ;;  %v456_v46 = vand.u32 2147483648, %v427_v18  ;;  %v454_v49 = vand.u32 2147483647, %v427_v18  ;;  %vm450_vm10 = vweird.f32 %v427_v18 }
 0x2f8   :  { %v432_v22 = vsub.f32 1.0, %v431_v19  ;;  %635 = vmatpush.msrb.mxu1 %v612_v21 }
 0x2f9   :  { %v396_v24 = vpop.xlane.xlu2 %395  ;;  %v457_v54 = vor.u32 1.1754944e-38, %v456_v46  ;;  %vm455_vm12 = vcmp.eq.f32.partialorder %v454_v49, 8.507059e+37 }
 0x2fa   :  { %v433_v25 = vmul.f32 %v738_v17, %v432_v22  ;;  %v413_v26 = vadd.f32 %v405_v20, %v396_v24  ;;  %636 = vmatpush.msrb.mxu1 %v611_v27  ;;  %v732_v27 = vld [vmem:[#allocation6 + $0x2d0] ss:$0 sm:$0xff] }
 0x2fc   :  { %v740_v32 = vpop.eup %739  ;;  %v721_v33 = vmul.f32 -1.442695, %v413_v26  ;;  %v434_v38 = vadd.f32 %v738_v17, %v433_v25  ;;  %637 = vmatpush.msrb.mxu1 %v610_v58 }
 0x2fd   :  { %v742_v36 = vpop.eup %741  ;;  %v940_v37 = vadd.f32 1.0, %v740_v32 }
 0x2fe   :  { %v446_v39 = vmul.f32 %v742_v36, %v427_v18  ;;  %743 = vpow2.f32 %v721_v33  ;;  %v438_v47 = vsel %vm946_vm7, %v738_v17, %v434_v38  ;;  %vm451_vm8 = vweird.f32 %v742_v36 }
 0x2ff   :  { %745 = vrcp.f32 %v940_v37  ;;  %v443_v31 = vsel %vm440_vm9, %v442_v28, %v438_v47  ;;  %vm452_vm11 = vmor %vm450_vm10, %vm451_vm8  ;;  %v471_v0 = vand.u32 2147483648, %v940_v37  ;;  %v469_v4 = vand.u32 2147483647, %v940_v37 }
 0x300   :  { %v447_v43 = vsub.f32 1.0, %v446_v39  ;;  %v490_v60 = vmul.f32 %v443_v31, %v908_v29  ;;  %vm465_vm14 = vweird.f32 %v940_v37 }
 0x301   :  { %v472_v8 = vor.u32 1.1754944e-38, %v471_v0  ;;  %vm470_vm0 = vcmp.eq.f32.partialorder %v469_v4, 8.507059e+37  ;;  %v657_v0 = vld [vmem:[#allocation6 + $0x178] sm:$0xff] }
 0x302   :  { %v448_v48 = vmul.f32 %v742_v36, %v447_v43  ;;  %v494_v29 = vsel %vm236_vm1, %v490_v60, 0.0  ;;  %v660_v60 = vld [vmem:[#allocation6 + $0x190] sm:$0xff]  ;;  %v653_v4 = vld [vmem:[#allocation6 + $0x158] sm:$0xff] }
 0x303   :  { %v495_v15 = vrot.slane %v494_v29, 4 }
 0x304   :  { %v744_v51 = vpop.eup %743  ;;  %v449_v52 = vadd.f32 %v742_v36, %v448_v48 }
 0x305   :  { %v746_v53 = vpop.eup %745  ;;  %v429_v55 = vadd.f32 1.0, %v744_v51  ;;  %v496_v25 = vadd.f32 %v495_v15, %v494_v29  ;;  %v649_v29 = vld [vmem:[#allocation6 + $0x138] sm:$0xff] }
 0x306   :  { %v453_v56 = vsel %vm452_vm11, %v742_v36, %v449_v52  ;;  %v461_v57 = vmul.f32 %v746_v53, %v940_v37  ;;  %vm466_vm13 = vweird.f32 %v746_v53  ;;  %v618_v15 = vld [vmem:[#allocation6 + $0x2b8] sm:$0xf] }
 0x307   :  { %v458_v59 = vsel %vm455_vm12, %v457_v54, %v453_v56  ;;  %747 = vrcp.f32 %v429_v55  ;;  %vm467_vm15 = vmor %vm465_vm14, %vm466_vm13  ;;  %v486_v19 = vand.u32 2147483648, %v429_v55  ;;  %v484_v23 = vand.u32 2147483647, %v429_v55 }
 0x308   :  { %v491_v62 = vmul.f32 %v458_v59, %v912_v61  ;;  %v462_v63 = vsub.f32 1.0, %v461_v57  ;;  %vm480_vm6 = vweird.f32 %v429_v55  ;;  %v497_v38 = vrot.slane %v496_v25, 2  ;;  %v661_v59 = vld [vmem:[#allocation6 + $0x198] sm:$0xff] }
 0x309   :  { %v487_v33 = vor.u32 1.1754944e-38, %v486_v19  ;;  %vm485_vm8 = vcmp.eq.f32.partialorder %v484_v23, 8.507059e+37  ;;  %664 = vmatpush.msrb.mxu3 %v661_v59  ;;  %v731_v23 = vld [vmem:[#allocation6 + $0x2c8] ss:$0 sm:$0xff] }
 0x30a   :  { %v463_v3 = vmul.f32 %v746_v53, %v462_v63  ;;  %v501_v5 = vsel %vm236_vm1, %v491_v62, 0.0  ;;  %v498_v44 = vadd.f32 %v497_v38, %v496_v25  ;;  %v659_v62 = vld [vmem:[#allocation6 + $0x188] sm:$0xff]  ;;  %v658_v63 = vld [vmem:[#allocation6 + $0x180] sm:$0xff] }
 0x30b   :  { %v502_v9 = vrot.slane %v501_v5, 4  ;;  %665 = vmatpush.msrb.mxu3 %v660_v60 }
 0x30c   :  { %v464_v7 = vadd.f32 %v746_v53, %v463_v3  ;;  %v499_v49 = vrot.slane %v498_v44, 1  ;;  %v654_v3 = vld [vmem:[#allocation6 + $0x160] sm:$0xff] }
 0x30d   :  { %v748_v61 = vpop.eup %747  ;;  %v503_v20 = vadd.f32 %v502_v9, %v501_v5  ;;  %666 = vmatpush.msrb.mxu3 %v659_v62  ;;  %v652_v5 = vld [vmem:[#allocation6 + $0x150] sm:$0xff] }
 0x30e   :  { %v468_v11 = vsel %vm467_vm15, %v746_v53, %v464_v7  ;;  %v476_v12 = vmul.f32 %v748_v61, %v429_v55  ;;  %vm481_vm5 = vweird.f32 %v748_v61  ;;  %v500_v30 = vadd.f32 %v499_v49, %v498_v44  ;;  %v569_v55 = vpop.permute.xlu1 %568  ;;  %v650_v7 = vld [vmem:[#allocation6 + $0x140] sm:$0xff] }
 0x30f   :  { %v473_v14 = vsel %vm470_vm0, %v472_v8, %v468_v11  ;;  %vm482_vm7 = vmor %vm480_vm6, %vm481_vm5  ;;  %v504_v35 = vrot.slane %v503_v20, 2  ;;  %667 = vmatpush.msrb.mxu3 %v658_v63  ;;  %v648_v11 = vld [vmem:[#allocation6 + $0x130] sm:$0xff] }
 0x310   :  { %v477_v17 = vsub.f32 1.0, %v476_v12  ;;  %v492_v18 = vmul.f32 %v473_v14, %v920_v13  ;;  %v647_v12 = vld [vmem:[#allocation6 + $0x128] sm:$0xff]  ;;  %v646_v14 = vld [vmem:[#allocation6 + $0x120] sm:$0xff] }
 0x311   :  { %v505_v41 = vadd.f32 %v504_v35, %v503_v20  ;;  %668 = vmatpush.msrb.mxu3 %v657_v0  ;;  %v730_v20 = vld [vmem:[#allocation6 + $0x2c0] ss:$0 sm:$0xff] }
 0x312   :  { %v478_v22 = vmul.f32 %v748_v61, %v477_v17  ;;  %v508_v24 = vsel %vm236_vm1, %v492_v18, 0.0 }
 0x313   :  { %v509_v26 = vrot.slane %v508_v24, 4  ;;  %v506_v46 = vrot.slane %v505_v41, 1  ;;  %669 = vmatpush.msrb.mxu3 %v656_v1 }
 0x314   :  { %v479_v32 = vadd.f32 %v748_v61, %v478_v22 }
 0x315   :  { %v510_v13 = vadd.f32 %v509_v26, %v508_v24  ;;  %v507_v28 = vadd.f32 %v506_v46, %v505_v41  ;;  %670 = vmatpush.msrb.mxu3 %v655_v2 }
 0x316   :  { %v483_v36 = vsel %vm482_vm7, %v748_v61, %v479_v32  ;;  %v588_v61 = vld [vmem:[#allocation6 + $0x2b0] sm:$0xf] }
 0x317   :  { %v488_v37 = vsel %vm485_vm8, %v487_v33, %v483_v36  ;;  %v511_v39 = vrot.slane %v510_v13, 2  ;;  %v555_v54 = vsel %vm554_vm2, %v507_v28, %v500_v30  ;;  %671 = vmatpush.msrb.mxu3 %v654_v3  ;;  %vm688_vm2 = vcmask 517120  }
 0x318   :  { %v493_v40 = vmul.f32 %v488_v37, %v926_v34 }
 0x319   :  { %v512_v42 = vadd.f32 %v511_v39, %v510_v13  ;;  %672 = vmatpush.msrb.mxu3 %v653_v4 }
 0x31a   :  { %v515_v43 = vsel %vm236_vm1, %v493_v40, 0.0 }
 0x31b   :  { %v516_v45 = vrot.slane %v515_v43, 4  ;;  %v513_v48 = vrot.slane %v512_v42, 1  ;;  %673 = vmatpush.msrb.mxu3 %v652_v5 }
 0x31d   :  { %v517_v47 = vadd.f32 %v516_v45, %v515_v43  ;;  %v514_v52 = vadd.f32 %v513_v48, %v512_v42  ;;  %674 = vmatpush.msrb.mxu3 %v651_v6 }
 0x31f   :  { %v518_v50 = vrot.slane %v517_v47, 2  ;;  %v557_v34 = vsel %vm556_vm3, %v514_v52, %v555_v54  ;;  %675 = vmatpush.msrb.mxu3 %v650_v7 }
 0x321   :  { %v519_v51 = vadd.f32 %v518_v50, %v517_v47  ;;  %676 = vmatpush.msrb.mxu3 %v649_v29 }
 0x323   :  { %v520_v53 = vrot.slane %v519_v51, 1  ;;  %677 = vmatpush.msrb.mxu3 %v648_v11 }
 0x325   :  { %v521_v31 = vadd.f32 %v520_v53, %v519_v51  ;;  %678 = vmatpush.msrb.mxu3 %v647_v12 }
 0x327   :  { %v559_v56 = vsel %vm558_vm4, %v521_v31, %v557_v34  ;;  %679 = vmatpush.msrb.mxu3 %v646_v14 }
 0x328   :  { %v571_v57 = vsel %vm236_vm1, %v559_v56, %v569_v55 }
 0x329   :  { %605 = vmatmul.f32.vlgmr.msrb.gmra.mxu0 %v571_v57 }
 0x3a6   :  { %v606_v8 = vpop.f32.mrf.mxu0 }
 0x3a7   :  { %v607_v9 = vadd.f32 %v606_v8, %v588_v61 }
 0x3a9   :  { %v609_v10 = vmax.f32 %v607_v9, 0.0 }
 0x3ab   :  { %722 = vmatmul.msk.f32.vlgmr.msrb.gmra.mxu1 %vm236_vm1, %v609_v10 }
 0x428   :  { %v639_v16 = vpop.f32.mrf.mxu1 }
 0x429   :  { %v640_v17 = vadd.f32 %v639_v16, %v618_v15 }
 0x42b   :  { %v643_v18 = vrot.slane %v640_v17, 2 }
 0x42d   :  { %v645_v19 = vadd.f32 %v643_v18, %v640_v17 }
 0x42f   :  { %680 = vmatmul.f32.vlgmr.msrb.gmra.mxu3 %v645_v19 }
 0x4b2   :  { %v681_v21 = vpop.f32.mrf.mxu3 }
 0x4b3   :  { %v682_v22 = vadd.f32 %v730_v20, %v681_v21 }
 0x4b5   :  { %v684_v24 = vmax.f32 %v682_v22, 0.0 }
 0x4b7   :  { %v687_v25 = vmul.f32 %v731_v23, %v684_v24 }
 0x4b9   :  { %v689_v26 = vsel %vm688_vm2, %v687_v25, 0.0 }
 0x4ba   :  { %690 = vadd.xlane.f32.xlu2 %v689_v26 }
 0x52d   :  { %v691_v32 = vpop.xlane.xlu2 %690 }
 0x52e   :  { %v694_v33 = vadd.f32 %v732_v27, %v691_v32 }
 0x530   :  { %695 = vst [vmem:[%s975_s3] sm:$0x3] %v694_v33 }
 0x531   :  { %700 = vsyncpa [#allocation3], 1 }
 0x532   :  { %701 = vsyncpa [#allocation5], 1 }

</bundles_post_ra>
